<compile_context>
chip_gen: v6e
topology: v6e:2x2x1
jax: 0.10.0
libtpu: 0.0.40
codegen_flags: <defaults>
</compile_context>

<pallas_src>
from functools import partial

import jax
import jax.numpy as jnp
from jax import lax
from jax.experimental import pallas as pl
from jax.experimental.pallas import tpu as pltpu


def _cls_loss_kernel(pred_ref, tgt_ref, out_ref, *, b_total):
    i = pl.program_id(0)

    x = pred_ref[...].astype(jnp.float32)          # (TB, C) logits, cast on VPU
    tgt = tgt_ref[...]                             # (TB, 1) int32 class ids
    tb, c = x.shape

    # class-index iota along lanes; reused for the target mask and the argmax path
    cls_i = lax.broadcasted_iota(jnp.int32, (tb, c), 1)
    cls_f = cls_i.astype(jnp.float32)              # exact for C < 2^24

    # ---- cross-entropy partial sum over this tile ----
    row_max = jnp.max(x, axis=-1, keepdims=True)                         # XLU
    ex = jnp.exp(x - row_max)                                            # EUP
    lse = jnp.log(jnp.sum(ex, axis=-1, keepdims=True)) + row_max         # (TB, 1)
    tgt_logit = jnp.sum(jnp.where(cls_i == tgt, x, 0.0), axis=-1, keepdims=True)
    per_example = lse - tgt_logit                                        # (TB, 1)

    # ---- accuracy: first-max index (torch.argmax tie-break) == target ----
    masked = jnp.where(x == row_max, cls_f, jnp.float32(c))
    pred_idx = jnp.min(masked, axis=-1, keepdims=True)                   # (TB, 1)
    hit = (pred_idx == tgt.astype(jnp.float32)).astype(jnp.float32)      # (TB, 1)

    # valid-row masking only when B is not a multiple of the tile (static check)
    if b_total % tb != 0:
        row_ids = lax.broadcasted_iota(jnp.int32, (tb, 1), 0) + i * tb
        valid = row_ids < b_total
        per_example = jnp.where(valid, per_example, 0.0)
        hit = jnp.where(valid, hit, 0.0)

    loss_sum = jnp.sum(per_example, axis=0, keepdims=True)               # (1, 1)
    hit_sum = jnp.sum(hit, axis=0, keepdims=True)                        # (1, 1)

    # lane-dense (8,128) partial block: loss-sum at [0,0], correct-count at [1,0]
    r = lax.broadcasted_iota(jnp.int32, (8, 128), 0)
    l = lax.broadcasted_iota(jnp.int32, (8, 128), 1)
    out_ref[...] = jnp.where((r == 0) & (l == 0), loss_sum,
                             jnp.where((r == 1) & (l == 0), hit_sum, 0.0))


def classification_loss(pred, targets, *, tb=None):
    """pred: (B, C) float logits (any float dtype); targets: (B,) int class ids.
    Returns (loss, accuracy) as scalar float32."""
    B, C = pred.shape
    targets_2d = targets.astype(jnp.int32).reshape(B, 1)

    itemsize = jnp.dtype(pred.dtype).itemsize
    # sublane multiple required when a block does not span the full row dim
    sub = {1: 32, 2: 16, 4: 8}.get(itemsize, 8)
    if tb is None:
        # ~2 MiB of logits per tile: double-buffered inputs + f32 intermediates stay
        # well under the scoped VMEM default on v5e/v6e/v7x.
        rows = max(sub, (2 * 1024 * 1024) // max(C * itemsize, 1))
        tb = min(4096, rows)
    if tb >= B:
        tb = B                                # single tile: block == full dim, always legal
    else:
        tb = max(sub, (tb // sub) * sub)      # partial tiles must be sublane-aligned

    num_tiles = pl.cdiv(B, tb)

    partials = pl.pallas_call(
        partial(_cls_loss_kernel, b_total=B),
        out_shape=jax.ShapeDtypeStruct((num_tiles * 8, 128), jnp.float32),
        grid_spec=pltpu.PrefetchScalarGridSpec(
            num_scalar_prefetch=0,
            grid=(num_tiles,),
            in_specs=[
                pl.BlockSpec((tb, C), lambda i: (i, 0)),   # logits tile
                pl.BlockSpec((tb, 1), lambda i: (i, 0)),   # int32 targets tile
            ],
            out_specs=pl.BlockSpec((8, 128), lambda i: (i, 0)),  # per-tile partials
        ),
        compiler_params=pltpu.CompilerParams(
            # tiles are fully independent -> megacore-shardable batch axis on v7x
            dimension_semantics=("parallel",),
        ),
    )(pred, targets_2d)

    # tiny cross-tile reduce + normalization (fuses into one small XLA op)
    sums = partials.reshape(num_tiles, 8, 128).sum(axis=0)
    loss = sums[0, 0] / jnp.float32(B)
    accuracy = 100.0 * sums[1, 0] / jnp.float32(B)
    return loss, accuracy


def _reference(pred, targets):
    B = pred.shape[0]
    logits = pred.astype(jnp.float32)
    logp = jax.nn.log_softmax(logits, axis=-1)
    ref_loss = -jnp.mean(logp[jnp.arange(B), targets])
    ref_acc = 100.0 * jnp.mean((jnp.argmax(logits, axis=-1) == targets).astype(jnp.float32))
    return ref_loss, ref_acc


if __name__ == "__main__":
    key = jax.random.PRNGKey(0)
    k1, k2 = jax.random.split(key)

    B, C = 20, 32                       # small shapes; B not a multiple of the tile -> exercises masking
    pred = jax.random.normal(k1, (B, C), dtype=jnp.float32)
    targets = jax.random.randint(k2, (B,), 0, C, dtype=jnp.int32)

    # 1) multi-tile path with a padded last tile (tb=8 -> grid of 3)
    loss_mt, acc_mt = classification_loss(pred, targets, tb=8)
    # 2) default single-tile path, native bf16 logits (no wrapper cast)
    pred_bf16 = pred.astype(jnp.bfloat16)
    loss_bf, acc_bf = classification_loss(pred_bf16, targets)
    jax.block_until_ready((loss_mt, acc_mt, loss_bf, acc_bf))

    ref_loss, ref_acc = _reference(pred, targets)
    ref_loss_bf, ref_acc_bf = _reference(pred_bf16, targets)

    assert jnp.allclose(loss_mt, ref_loss, atol=1e-4), (loss_mt, ref_loss)
    assert jnp.allclose(acc_mt, ref_acc, atol=1e-4), (acc_mt, ref_acc)
    assert jnp.allclose(loss_bf, ref_loss_bf, atol=1e-4), (loss_bf, ref_loss_bf)
    assert jnp.allclose(acc_bf, ref_acc_bf, atol=1e-4), (acc_bf, ref_acc_bf)

    print("KERNEL_OK")
</pallas_src>

<mosaic_0001>
module attributes {stable_mosaic.version = 11 : i64} {
  func.func @_cls_loss_kernel(%arg0: i32, %arg1: memref<8x32xf32, #tpu.memory_space<vmem>>, %arg2: memref<8x1xi32, #tpu.memory_space<vmem>>, %arg3: memref<8x128xf32, #tpu.memory_space<vmem>>) attributes {dimension_semantics = [#tpu.dimension_semantics<parallel>], iteration_bounds = array<i64: 3>, scalar_prefetch = 0 : i64, scratch_operands = 0 : i64, tpu.core_type = #tpu.core_type<tc>, window_params = [{transform_indices = @transform_0, window_bounds = array<i64: 8, 32>}, {transform_indices = @transform_1, window_bounds = array<i64: 8, 1>}, {transform_indices = @transform_2, window_bounds = array<i64: 8, 128>}]} {
    %c0 = arith.constant 0 : index
    %c0_0 = arith.constant 0 : index
    %0 = vector.load %arg1[%c0, %c0_0] : memref<8x32xf32, #tpu.memory_space<vmem>>, vector<8x32xf32>
    %c0_1 = arith.constant 0 : index
    %c0_2 = arith.constant 0 : index
    %1 = vector.load %arg2[%c0_1, %c0_2] : memref<8x1xi32, #tpu.memory_space<vmem>>, vector<8x1xi32>
    %2 = tpu.iota {dimensions = array<i32: 1>} : vector<8x32xi32>
    %3 = arith.sitofp %2 : vector<8x32xi32> to vector<8x32xf32>
    %cst = arith.constant dense<0xFF800000> : vector<8xf32>
    %4 = vector.multi_reduction <maximumf>, %0, %cst [1] : vector<8x32xf32> to vector<8xf32>
    %5 = vector.shape_cast %4 : vector<8xf32> to vector<8x1xf32>
    %6 = vector.broadcast %5 : vector<8x1xf32> to vector<8x32xf32>
    %7 = arith.subf %0, %6 : vector<8x32xf32>
    %8 = math.exp %7 : vector<8x32xf32>
    %cst_3 = arith.constant dense<0.000000e+00> : vector<8xf32>
    %9 = vector.multi_reduction <add>, %8, %cst_3 [1] : vector<8x32xf32> to vector<8xf32>
    %10 = vector.shape_cast %9 : vector<8xf32> to vector<8x1xf32>
    %11 = math.log %10 : vector<8x1xf32>
    %12 = arith.addf %11, %5 : vector<8x1xf32>
    %13 = vector.broadcast %1 : vector<8x1xi32> to vector<8x32xi32>
    %14 = arith.cmpi eq, %2, %13 : vector<8x32xi32>
    %cst_4 = arith.constant 0.000000e+00 : f32
    %15 = vector.broadcast %cst_4 : f32 to vector<8x32xf32>
    %16 = arith.select %14, %0, %15 : vector<8x32xi1>, vector<8x32xf32>
    %cst_5 = arith.constant dense<0.000000e+00> : vector<8xf32>
    %17 = vector.multi_reduction <add>, %16, %cst_5 [1] : vector<8x32xf32> to vector<8xf32>
    %18 = vector.shape_cast %17 : vector<8xf32> to vector<8x1xf32>
    %19 = arith.subf %12, %18 : vector<8x1xf32>
    %20 = vector.broadcast %5 : vector<8x1xf32> to vector<8x32xf32>
    %21 = arith.cmpf oeq, %0, %20 : vector<8x32xf32>
    %cst_6 = arith.constant 3.200000e+01 : f32
    %22 = vector.broadcast %cst_6 : f32 to vector<8x32xf32>
    %23 = arith.select %21, %3, %22 : vector<8x32xi1>, vector<8x32xf32>
    %cst_7 = arith.constant dense<0x7F800000> : vector<8xf32>
    %24 = vector.multi_reduction <minimumf>, %23, %cst_7 [1] : vector<8x32xf32> to vector<8xf32>
    %25 = vector.shape_cast %24 : vector<8xf32> to vector<8x1xf32>
    %26 = arith.sitofp %1 : vector<8x1xi32> to vector<8x1xf32>
    %27 = arith.cmpf oeq, %25, %26 : vector<8x1xf32>
    %28 = arith.extui %27 : vector<8x1xi1> to vector<8x1xi32>
    %29 = arith.sitofp %28 : vector<8x1xi32> to vector<8x1xf32>
    %30 = tpu.iota {dimensions = array<i32: 0>} : vector<8x1xi32>
    %c8_i32 = arith.constant 8 : i32
    %31 = arith.muli %arg0, %c8_i32 : i32
    %32 = vector.broadcast %31 : i32 to vector<8x1xi32>
    %33 = arith.addi %30, %32 : vector<8x1xi32>
    %c20_i32 = arith.constant 20 : i32
    %34 = vector.broadcast %c20_i32 : i32 to vector<8x1xi32>
    %35 = arith.cmpi slt, %33, %34 : vector<8x1xi32>
    %cst_8 = arith.constant 0.000000e+00 : f32
    %36 = vector.broadcast %cst_8 : f32 to vector<8x1xf32>
    %37 = arith.select %35, %19, %36 : vector<8x1xi1>, vector<8x1xf32>
    %cst_9 = arith.constant 0.000000e+00 : f32
    %38 = vector.broadcast %cst_9 : f32 to vector<8x1xf32>
    %39 = arith.select %35, %29, %38 : vector<8x1xi1>, vector<8x1xf32>
    %cst_10 = arith.constant dense<0.000000e+00> : vector<1xf32>
    %40 = vector.multi_reduction <add>, %37, %cst_10 [0] : vector<8x1xf32> to vector<1xf32>
    %41 = vector.shape_cast %40 : vector<1xf32> to vector<1x1xf32>
    %cst_11 = arith.constant dense<0.000000e+00> : vector<1xf32>
    %42 = vector.multi_reduction <add>, %39, %cst_11 [0] : vector<8x1xf32> to vector<1xf32>
    %43 = vector.shape_cast %42 : vector<1xf32> to vector<1x1xf32>
    %44 = tpu.iota {dimensions = array<i32: 0>} : vector<8x128xi32>
    %45 = tpu.iota {dimensions = array<i32: 1>} : vector<8x128xi32>
    %c0_i32 = arith.constant 0 : i32
    %46 = vector.broadcast %c0_i32 : i32 to vector<8x128xi32>
    %47 = arith.cmpi eq, %44, %46 : vector<8x128xi32>
    %c0_i32_12 = arith.constant 0 : i32
    %48 = vector.broadcast %c0_i32_12 : i32 to vector<8x128xi32>
    %49 = arith.cmpi eq, %45, %48 : vector<8x128xi32>
    %50 = arith.andi %47, %49 : vector<8x128xi1>
    %c1_i32 = arith.constant 1 : i32
    %51 = vector.broadcast %c1_i32 : i32 to vector<8x128xi32>
    %52 = arith.cmpi eq, %44, %51 : vector<8x128xi32>
    %c0_i32_13 = arith.constant 0 : i32
    %53 = vector.broadcast %c0_i32_13 : i32 to vector<8x128xi32>
    %54 = arith.cmpi eq, %45, %53 : vector<8x128xi32>
    %55 = arith.andi %52, %54 : vector<8x128xi1>
    %cst_14 = arith.constant 0.000000e+00 : f32
    %56 = vector.shape_cast %43 : vector<1x1xf32> to vector<1x1xf32>
    %57 = vector.broadcast %56 : vector<1x1xf32> to vector<8x128xf32>
    %58 = vector.broadcast %cst_14 : f32 to vector<8x128xf32>
    %59 = arith.select %55, %57, %58 : vector<8x128xi1>, vector<8x128xf32>
    %60 = vector.shape_cast %41 : vector<1x1xf32> to vector<1x1xf32>
    %61 = vector.broadcast %60 : vector<1x1xf32> to vector<8x128xf32>
    %62 = arith.select %50, %61, %59 : vector<8x128xi1>, vector<8x128xf32>
    %c0_15 = arith.constant 0 : index
    %c0_16 = arith.constant 0 : index
    %63 = vector.load %arg3[%c0_15, %c0_16] : memref<8x128xf32, #tpu.memory_space<vmem>>, vector<8x128xf32>
    tpu.vector_store %arg3[%c0_15, %c0_16], %62 {strides = array<i32>} : memref<8x128xf32, #tpu.memory_space<vmem>>, vector<8x128xf32>,
    return
  }
  func.func @transform_0(%arg0: i32) -> (i32, i32) {
    %c0_i32 = arith.constant 0 : i32
    %c0_i32_0 = arith.constant 0 : i32
    return %arg0, %c0_i32 : i32, i32
  }
  func.func @transform_1(%arg0: i32) -> (i32, i32) {
    %c0_i32 = arith.constant 0 : i32
    %c0_i32_0 = arith.constant 0 : i32
    return %arg0, %c0_i32 : i32, i32
  }
  func.func @transform_2(%arg0: i32) -> (i32, i32) {
    %c0_i32 = arith.constant 0 : i32
    %c0_i32_0 = arith.constant 0 : i32
    return %arg0, %c0_i32 : i32, i32
  }
}

</mosaic_0001>

<bundles_post_ra>
// kernel: tpu_custom_call.1
= control target key start
LH: loop header
LB: loop body
LE: loop exit
PB: predicated region body
PF: predicated region fallthrough
CT: control target
= control target key end

     0   :  { %7 = vsyncpa [#allocation3], 0  ;;  %s555_s0 = inlined_call_operand.vmem [shape: f32[20,32], index: 0, kind: input, shape index: {}]   ;;  %s556_s1 = inlined_call_operand.vmem [shape: s32[20,1], index: 1, kind: input, shape index: {}]   ;;  %s557_s2 = inlined_call_operand.hbm [shape: f32[24,128], index: 2, kind: output, shape index: {}]  }
   0x1   :  { %9 = vsyncpa [#allocation3 + $0x1], 0  ;;  %s452_s9 = smov 0   ;;  %s454_s10 = smov 0  }
   0x2   :  { %s456_s11 = smov 0   ;;  %s458_s12 = smov 0  }
   0x3 LB: > { %s473_s13 = sadd.s32 4294967295, %s432_s12   ;;  %s312_s14 = sadd.s32 4294967294, %s432_s12   ;;  %s432_s12 = sphi %s458_s12, %s563_s12   ;;  %s428_s11 = sphi %s456_s11, %s562_s11   ;;  %s424_s10 = sphi %s454_s10, %s561_s10   ;;  %s420_s9 = sphi %s452_s9, %s560_s9  }
   0x4   : > { %s477_s15 = sadd.s32 1, %s432_s12   ;;  %s74_s16 = sadd.s32 1, %s428_s11 }
   0x5   : > { %s71_s17 = ssub.s32 %s432_s12, %s477_s15  ;;  %p84_p0 = scmp.ne.s32.totalorder %s428_s11, %s424_s10 }
   0x6   : > { %p72_p1 = scmp.eq.s32.totalorder %s71_s17, 0  ;;  %p85_p2 = scmp.eq.s32.totalorder %s473_s13, 2 }
   0x7   : > { %p90_p3 = scmp.ne.s32.totalorder %s424_s10, %s420_s9  ;;  %p91_p4 = scmp.eq.s32.totalorder %s312_s14, 2 }
   0x8   : > { %s488_s18 = scalar_select %p72_p1, %s428_s11, %s74_s16  }
   0x9   : > { %p490_p5 = por %p85_p2, %p84_p0  ;;  %p494_p6 = por %p91_p4, %p90_p3 }
   0xa   : > { %p315_p7 = scmp.ge.s32.totalorder %s432_s12, 1  ;;  %p123_p8 = scmp.lt.s32.totalorder %s432_s12, 4 }
   0xc   : > { %p124_p9 = pnand %p315_p7, %p123_p8 }
   0xd   : > { %p148_p10 = scmp.lt.s32.totalorder (!%p124_p9), %s473_s13, 2  ;;  %s320_s29 = sshll.u32 (!%p124_p9), %s473_s13, 3 }
   0xe   : > { %127 = sbr.rel (%p124_p9) target bundleno = 459 (0x1cb), region = 28  ;;  %s145_s30 = sand.u32 (!%p124_p9), 1, %s424_s10  }
   0xf   : > { %s316_s3 = sshll.u32 (!%p124_p9), %s145_s30, 3  ;;  %s322_s4 = sshll.u32 (!%p124_p9), %s473_s13, 7 }
  0x10   : > { %s147_s5 = scalar_lea.vmem (!%p124_p9), [#allocation2], %s316_s3  ;;  %s520_s14 = scalar_lea.hbm (!%p124_p9), %s557_s2, %s322_s4 }
  0x11   : > { %s241_s6 = sshll.u32 (!%p124_p9), %s147_s5, 4  ;;  %s228_s16 = scalar_lea.sflag (!%p124_p9), [#allocation3], %s145_s30  ;;  %s242_s6 = int_to_ptr.vmem [resolvable:$true] %s241_s6 }
  0x12   : > { %s372_s17 = scalar_lea.vmem (!%p124_p9), %s242_s6, 128 }
  0x13   : > { %v434_v0 = vmov 0   ;;  %s149_s21 = scalar_select %p148_p10, %s473_s13, 2  ;;  %vm161_vm0 = vcmask 261120   ;;  %v158_v4 = vlaneseq  ;;  %v195_v18 = vstv %s320_s29 }
  0x14   : > { %366 = vset.pattern.permute.xlu0 %v434_v0  ;;  %367 = vset.pattern.permute.xlu1 %v434_v0  ;;  %vm206_vm4 = vcmask 7168   ;;  %v435_v22 = vmov 0.0   ;;  %p373_p11 = scmp.ne.s32.totalorder %s242_s6, %s372_s17  ;;  %s436_s13 = smov [#allocation2]  }
  0x15   : > { %s317_s22 = sshll.u32 %s149_s21, 3  ;;  %v159_v5 = vand.u32 127, %v158_v4  ;;  %v193_v17 = vshrl.u32 %v158_v4, 7  ;;  %s376_s21 = sshll.u32 %s436_s13, 4  ;;  %s377_s21 = int_to_ptr.vmem [resolvable:$false] %s376_s21 }
  0x16   : > { %s151_s25 = scalar_lea.vmem %s555_s0, %s317_s22  ;;  %s155_s28 = scalar_lea.vmem %s556_s1, %s317_s22 }
  0x17   : > { %v156_v1 = vld [vmem:[%s151_s25] sm:$0xff]  ;;  %v160_v6 = vcvt.s32.f32 %v159_v5  ;;  %v196_v19 = vadd.s32 %v195_v18, %v193_v17  ;;  %vm215_vm6 = vcmp.eq.s32.totalorder %v159_v5, 0  ;;  %vm217_vm7 = vcmp.eq.s32.totalorder %v193_v17, 1  ;;  %p374_p12 = pnand %p373_p11, %p490_p5  ;;  %s378_s22 = scalar_lea.vmem %s377_s21, 256 }
  0x18   : > { %v162_v2 = vsel %vm161_vm0, %v156_v1, -inf  ;;  %v157_v3 = vld [vmem:[%s155_s28] sm:$0xff]  ;;  %vm214_vm8 = vcmp.eq.s32.totalorder %v193_v17, 0  ;;  %vm218_vm9 = vmand %vm217_vm7, %vm215_vm6  ;;  %p379_p0 = scmp.lt.s32.totalorder %s242_s6, %s377_s21  ;;  %p380_p1 = scmp.lt.s32.totalorder %s378_s22, %s372_s17 }
  0x19   : > { %163 = vmax.xlane.f32.xlu0 %v162_v2  ;;  %v188_v20 = vcvt.s32.f32 %v157_v3  ;;  %vm197_vm3 = vcmp.lt.s32.totalorder %v196_v19, 20  ;;  %vm216_vm10 = vmand %vm214_vm8, %vm215_vm6  ;;  %p375_p13 = pneg %p374_p12 }
  0x1a   : > { %p381_p2 = por %p380_p1, %p379_p0 }
  0x1c   : > { %p382_p3 = pnand %p381_p2, %p375_p13 }
  0x2f   : > { %175 = vperm.xlu0 %366, %v157_v3  }
  0xa2   : > { %v164_v7 = vpop.xlane.xlu0 %163 }
  0xa3   : > { %v165_v8 = vsub.f32 %v156_v1, %v164_v7  ;;  %vm183_vm1 = vcmp.eq.f32.partialorder %v156_v1, %v164_v7 }
  0xa4   : > { %v184_v9 = vsel %vm183_vm1, %v160_v6, 32.0 }
  0xa5   : > { %v166_v10 = vmul.f32 1.442695, %v165_v8  ;;  %v185_v11 = vsel %vm161_vm0, %v184_v9, inf }
  0xa6   : > { %186 = vmin.xlane.f32.xlu1 %v185_v11 }
  0xa7   : > { %368 = vpow2.f32 %v166_v10 }
  0xaa   : > { %v176_v12 = vpop.permute.xlu0 %175 }
  0xab   : > { %vm177_vm2 = vcmp.eq.s32.totalorder %v159_v5, %v176_v12 }
  0xac   : > { %v178_v14 = vsel %vm177_vm2, %v156_v1, 0.0 }
  0xad   : > { %v179_v16 = vsel %vm161_vm0, %v178_v14, 0.0 }
  0xb4   : > { %v369_v13 = vpop.eup %368 }
  0xb5   : > { %v168_v15 = vsel %vm161_vm0, %v369_v13, 0.0 }
  0xb6   : > { %169 = vadd.xlane.f32.xlu1 %v168_v15 }
  0xba   : > { %180 = vadd.xlane.f32.xlu1 %v179_v16 }
 0x12f   : > { %v187_v21 = vpop.xlane.xlu1 %186 }
 0x130   : > { %vm189_vm5 = vcmp.eq.f32.partialorder %v187_v21, %v188_v20 }
 0x131   : > { %v319_v23 = vsel %vm189_vm5, 1.0, %v435_v22 }
 0x132   : > { %v199_v24 = vsel %vm197_vm3, %v319_v23, 0.0 }
 0x133   : > { %v207_v25 = vsel %vm206_vm4, %v199_v24, 0.0 }
 0x134   : > { %v208_v26 = vrot.slane %v207_v25, 4 }
 0x136   : > { %v209_v27 = vadd.f32 %v208_v26, %v207_v25 }
 0x138   : > { %v210_v28 = vrot.slane %v209_v27, 2 }
 0x13a   : > { %v211_v29 = vadd.f32 %v210_v28, %v209_v27 }
 0x13c   : > { %v212_v30 = vrot.slane %v211_v29, 1 }
 0x13e   : > { %v213_v31 = vadd.f32 %v212_v30, %v211_v29 }
 0x13f   : > { %v170_v32 = vpop.xlane.xlu1 %169 }
 0x140   : > { %221 = vperm.xlu1 %367, %v213_v31   ;;  %370 = vlog2.f32 %v170_v32 }
 0x143   : > { %v181_v36 = vpop.xlane.xlu1 %180 }
 0x14d   : > { %v371_v33 = vpop.eup %370 }
 0x14e   : > { %v172_v34 = vmul.f32 0.6931472, %v371_v33 }
 0x150   : > { %v173_v35 = vadd.f32 %v172_v34, %v164_v7 }
 0x152   : > { %v182_v37 = vsub.f32 %v173_v35, %v181_v36 }
 0x154   : > { %v198_v38 = vsel %vm197_vm3, %v182_v37, 0.0 }
 0x155   : > { %v200_v39 = vrot.slane %v198_v38, 4 }
 0x157   : > { %v201_v40 = vadd.f32 %v200_v39, %v198_v38 }
 0x159   : > { %v202_v41 = vrot.slane %v201_v40, 2 }
 0x15b   : > { %v203_v42 = vadd.f32 %v202_v41, %v201_v40 }
 0x15d   : > { %v204_v43 = vrot.slane %v203_v42, 1 }
 0x15f   : > { %v205_v44 = vadd.f32 %v204_v43, %v203_v42 }
 0x1bb   : > { %v222_v45 = vpop.permute.xlu1 %221 }
 0x1bc   : > { %v224_v46 = vsel %vm218_vm9, %v222_v45, 0.0 }
 0x1bd   : > { %v225_v47 = vsel %vm216_vm10, %v205_v44, %v224_v46 }
 0x1be   : > { %226 = vst [vmem:[%s147_s5] sm:$0xff] %v225_v47 }
 0x1bf   : > { %385 = shalt.err (!%p382_p3)
}
 0x1c0   : > { %s386_s23 = scalar_lea.hbm %s520_s14, 128  ;;  %s390_s26 = scalar_lea.hbm %s557_s2, 384 }
 0x1c1   : > { %p387_p4 = scmp.ne.s32.totalorder %s520_s14, %s386_s23  ;;  %p391_p9 = scmp.lt.s32.totalorder %s520_s14, %s557_s2 }
 0x1c2   : > { %p392_p10 = scmp.lt.s32.totalorder %s390_s26, %s386_s23 }
 0x1c3   : > { %p388_p7 = pnand %p387_p4, %p490_p5 }
 0x1c4   : > { %p393_p11 = por %p392_p10, %p391_p9 }
 0x1c5   : > { %p389_p8 = pneg %p388_p7 }
 0x1c7   : > { %p394_p12 = pnand %p393_p11, %p389_p8 }
 0x1c9   : > { %397 = shalt.err (!%p394_p12)
}
 0x1ca   : > { %325 = dma.vmem_to_hbm [thread:$0]  (%p490_p5), %s242_s6, 128, %s520_s14, %s228_s16  }
 0x1cb PF: > { %p331_p13 = scmp.ge.s32.totalorder %s432_s12, 2  ;;  %s253_s29 = sand.u32 1, %s420_s9  }
 0x1cc   : > { %s254_s30 = scalar_lea.sflag [#allocation3], %s253_s29 }
 0x1cd   : > { %p328_p0 = pnand %p331_p13, %p494_p6 }
 0x1cf   : > { %p329_p1 = pneg %p328_p0 }
 0x1d1   : > { %415 = dma.done.wait (%p329_p1), %s254_s30, 128  }
 0x1d2   : > { %417 = vsyncadd (%p329_p1), %s254_s30, 4294967168  ;;  %p12_p2 = scmp.ge.s32.totalorder %s477_s15, 5   ;;  %s560_s9 = smov %s424_s10 }
 0x1d3   : > { %s561_s10 = smov %s428_s11  ;;  %s562_s11 = smov %s488_s18 }
 0x1d4   : > { %s563_s12 = smov %s477_s15  ;;  %14 = sbr.rel (!%p12_p2) target bundleno = 3 (0x3), region = 66 }
 0x1d9   :  { %259 = vsyncpa [#allocation3], 1 }
 0x1da   :  { %261 = vsyncpa [#allocation3 + $0x1], 1 }

</bundles_post_ra>
